<compile_context>
chip_gen: v6e
topology: v6e:2x2x1
jax: 0.10.0
libtpu: 0.0.40
codegen_flags: <defaults>
</compile_context>

<pallas_src>
from functools import partial

import jax
import jax.numpy as jnp
import numpy as np
from jax.experimental import pallas as pl
from jax.experimental.pallas import tpu as pltpu


def _round_up(x, m):
    return ((x + m - 1) // m) * m


def get_positional_encodings(seq_len, d_model):
    """JAX port of the torch get_positional_encodings (interleaved sin/cos)."""
    position = jnp.arange(seq_len, dtype=jnp.float32)[:, None]              # (S, 1)
    div_term = jnp.exp(
        jnp.arange(0, d_model, 2, dtype=jnp.float32)
        * -(jnp.log(jnp.float32(10000.0)) / d_model)
    )                                                                        # (D/2,)
    angles = position * div_term                                             # (S, D/2)
    wpe = jnp.zeros((seq_len, d_model), dtype=jnp.float32)
    wpe = wpe.at[:, 0::2].set(jnp.sin(angles))
    wpe = wpe.at[:, 1::2].set(jnp.cos(angles))
    return wpe


def _embed_pos_kernel(ids_ref, pos_ref, table_ref, out_ref):
    # ids_ref:   (TILE_R, 1)   int32  flattened token ids (sublane-oriented;
    #                                 keep lane-width 1, do NOT transpose)
    # pos_ref:   (TILE_R, 1)   int32  V_pad + (row's position within its sequence)
    # table_ref: (V_total, D)  f32    fused embedding rows + wpe rows, VMEM-resident
    # out_ref:   (TILE_R, D)   f32    lane-dense output tile
    ids = ids_ref[...]
    pos = pos_ref[...]
    tile_r = out_ref.shape[0]
    v_total = table_ref.shape[0]
    col = jax.lax.broadcasted_iota(jnp.int32, (tile_r, v_total), 1)
    # "two-hot" selector row: picks the embedding row AND the wpe row; the MXU
    # matmul then produces embedding + positional encoding in one pass.
    sel = jnp.logical_or(col == ids, col == pos).astype(table_ref.dtype)
    out_ref[...] = jnp.dot(
        sel, table_ref[...], preferred_element_type=jnp.float32
    ).astype(out_ref.dtype)


def _make_table_spec(v_total, d):
    # Constant block index -> fetched once; single-buffered (no point
    # double-buffering a block that never changes).
    idx_map = lambda r: (0, 0)
    try:
        return pl.BlockSpec((v_total, d), idx_map, pipeline_mode=pl.Buffered(1))
    except TypeError:  # older jax without pipeline_mode kwarg
        return pl.BlockSpec((v_total, d), idx_map)


@partial(jax.jit, static_argnums=(2,))
def _encode_rows(ids2d, table_aug, v_pad):
    """ids2d: (B, S) int32; table_aug: (V_total, D) f32; v_pad: static int offset
    of the wpe rows inside table_aug.  Returns (B, S, D) f32."""
    B, S = ids2d.shape
    V_total, D = table_aug.shape
    R = B * S
    tile_r = 256 if R >= 256 else 128          # >=128 streamed rows per MXU push
    r_pad = _round_up(R, tile_r)

    ids_flat = ids2d.reshape(-1).astype(jnp.int32)
    if r_pad != R:
        ids_flat = jnp.pad(ids_flat, (0, r_pad - R))   # padded rows sliced off below
    ids_rows = ids_flat.reshape(r_pad, 1)
    # per-row positional index, pre-offset into the wpe block of table_aug
    pos_rows = (jnp.arange(r_pad, dtype=jnp.int32) % S + v_pad).reshape(r_pad, 1)

    # Explicit VMEM budget: single-buffered table + double-buffered row tiles.
    table_bytes = V_total * D * table_aug.dtype.itemsize
    tile_bytes = tile_r * D * 4 + 2 * tile_r * 4
    vmem_limit = int(min(max(table_bytes + 2 * tile_bytes + (4 << 20), 8 << 20),
                         100 << 20))

    out = pl.pallas_call(
        _embed_pos_kernel,
        out_shape=jax.ShapeDtypeStruct((r_pad, D), table_aug.dtype),
        grid=(r_pad // tile_r,),
        in_specs=[
            pl.BlockSpec((tile_r, 1), lambda r: (r, 0)),     # ids
            pl.BlockSpec((tile_r, 1), lambda r: (r, 0)),     # positions
            _make_table_spec(V_total, D),                    # resident fused table
        ],
        out_specs=pl.BlockSpec((tile_r, D), lambda r: (r, 0)),
        compiler_params=pltpu.CompilerParams(
            dimension_semantics=("arbitrary",),
            vmem_limit_bytes=vmem_limit),
    )(ids_rows, pos_rows, table_aug)
    return out[:R].reshape(B, S, D)


class RandomEmbeddingEncoderWPosEmbPallas:
    """Mirror of the torch module; params are deterministic synthetic arrays."""

    def __init__(self, embedding_dict, input_ids2dict_ids_lut, max_seq_len=20,
                 embed_dim=128, wpe_scale=1.0):
        assert embedding_dict.shape[1] == embed_dim
        assert embed_dim % 2 == 0, "positional encoding assumes even embed_dim"
        self.embedding_dict = embedding_dict                         # (V, D)
        self.input_ids2dict_ids = jnp.asarray(input_ids2dict_ids_lut, jnp.int32)
        self.max_seq_len = max_seq_len
        self.embed_dim = embed_dim
        self.wpe = get_positional_encodings(max_seq_len, embed_dim) * wpe_scale

        # Fuse (lut o embedding_dict) and append the wpe rows into one static,
        # lane-/sublane-padded table built ONCE here (nothing built per call).
        num_ids = int(self.input_ids2dict_ids.shape[0])
        fused = jnp.take(embedding_dict, self.input_ids2dict_ids, axis=0)   # (num_ids, D)
        v_pad = _round_up(num_ids, 128)
        v_total = _round_up(v_pad + max_seq_len, 128)
        table_bytes = v_total * embed_dim * 4
        assert table_bytes <= (40 << 20), (
            "fused table too large for the resident-table strategy; "
            "see TODO(synk) about the scalar-prefetch row-gather fallback")
        table = jnp.zeros((v_total, embed_dim), embedding_dict.dtype)
        table = table.at[:num_ids].set(fused)
        table = table.at[v_pad:v_pad + max_seq_len].set(
            self.wpe.astype(embedding_dict.dtype))
        self.num_input_ids = num_ids
        self.v_pad = v_pad
        self.table_aug = table

    def encode(self, input_ids, attention_mask=None):
        squeeze_batch = input_ids.ndim == 1
        ids2d = input_ids[None, :] if squeeze_batch else input_ids
        B, S = ids2d.shape
        assert S <= self.max_seq_len, "sequence longer than positional-encoding table"
        embeddings = _encode_rows(ids2d.astype(jnp.int32), self.table_aug, self.v_pad)
        if squeeze_batch:
            embeddings = embeddings[0]            # 2-D torch case: (S, D) + wpe[:S]
        return embeddings, attention_mask

    def __call__(self, input_ids, attention_mask=None):
        return self.encode(input_ids, attention_mask)


if __name__ == "__main__":
    key = jax.random.PRNGKey(0)
    k_emb, k_lut, k_ids = jax.random.split(key, 3)

    # small, deterministic synthetic parameters (synthetic kernel, no .pt load)
    VOCAB_DICT = 64          # rows in embedding_dict
    NUM_INPUT_IDS = 100      # size of input-id space that gets remapped
    EMBED_DIM = 128
    MAX_SEQ_LEN = 20
    B, S = 2, 8

    embedding_dict = jax.random.normal(k_emb, (VOCAB_DICT, EMBED_DIM), dtype=jnp.float32)
    input_ids2dict_ids = jax.random.randint(
        k_lut, (NUM_INPUT_IDS,), 0, VOCAB_DICT, dtype=jnp.int32)

    encoder = RandomEmbeddingEncoderWPosEmbPallas(
        embedding_dict, input_ids2dict_ids,
        max_seq_len=MAX_SEQ_LEN, embed_dim=EMBED_DIM, wpe_scale=1.0)

    input_ids = jax.random.randint(k_ids, (B, S), 0, NUM_INPUT_IDS, dtype=jnp.int32)
    attention_mask = jnp.ones((B, S), dtype=jnp.int32)

    # --- batched (3-D) path ---
    embeddings, out_mask = encoder(input_ids, attention_mask)
    embeddings = jax.block_until_ready(embeddings)

    dict_ids_ref = jnp.take(input_ids2dict_ids, input_ids.reshape(-1)).reshape(input_ids.shape)
    ref = embedding_dict[dict_ids_ref] + encoder.wpe[:S][None]
    assert embeddings.shape == (B, S, EMBED_DIM)
    assert embeddings.dtype == jnp.float32
    np.testing.assert_allclose(np.asarray(embeddings), np.asarray(ref), rtol=1e-6, atol=1e-6)
    assert out_mask is attention_mask

    # --- unbatched (2-D) path ---
    emb1d, _ = encoder(input_ids[0], None)
    emb1d = jax.block_until_ready(emb1d)
    ref1d = embedding_dict[dict_ids_ref[0]] + encoder.wpe[:S]
    assert emb1d.shape == (S, EMBED_DIM)
    np.testing.assert_allclose(np.asarray(emb1d), np.asarray(ref1d), rtol=1e-6, atol=1e-6)

    print("KERNEL_OK")
</pallas_src>

<mosaic_0001>
module attributes {stable_mosaic.version = 11 : i64} {
  func.func @_embed_pos_kernel(%arg0: i32, %arg1: memref<128x1xi32, #tpu.memory_space<vmem>>, %arg2: memref<128x1xi32, #tpu.memory_space<vmem>>, %arg3: memref<256x128xf32, #tpu.memory_space<vmem>>, %arg4: memref<128x128xf32, #tpu.memory_space<vmem>>) attributes {dimension_semantics = [#tpu.dimension_semantics<arbitrary>], iteration_bounds = array<i64: 1>, scalar_prefetch = 0 : i64, scratch_operands = 0 : i64, tpu.core_type = #tpu.core_type<tc>, window_params = [{transform_indices = @transform_0, window_bounds = array<i64: 128, 1>}, {transform_indices = @transform_1, window_bounds = array<i64: 128, 1>}, {pipeline_mode = #tpu.pipeline_mode<synchronous>, transform_indices = @transform_2, window_bounds = array<i64: 256, 128>}, {transform_indices = @transform_3, window_bounds = array<i64: 128, 128>}]} {
    %c0 = arith.constant 0 : index
    %c0_0 = arith.constant 0 : index
    %0 = vector.load %arg1[%c0, %c0_0] : memref<128x1xi32, #tpu.memory_space<vmem>>, vector<128x1xi32>
    %c0_1 = arith.constant 0 : index
    %c0_2 = arith.constant 0 : index
    %1 = vector.load %arg2[%c0_1, %c0_2] : memref<128x1xi32, #tpu.memory_space<vmem>>, vector<128x1xi32>
    %2 = tpu.iota {dimensions = array<i32: 1>} : vector<128x256xi32>
    %3 = vector.broadcast %0 : vector<128x1xi32> to vector<128x256xi32>
    %4 = arith.cmpi eq, %2, %3 : vector<128x256xi32>
    %5 = vector.broadcast %1 : vector<128x1xi32> to vector<128x256xi32>
    %6 = arith.cmpi eq, %2, %5 : vector<128x256xi32>
    %7 = arith.ori %4, %6 : vector<128x256xi1>
    %8 = arith.extui %7 : vector<128x256xi1> to vector<128x256xi32>
    %9 = arith.sitofp %8 : vector<128x256xi32> to vector<128x256xf32>
    %c0_3 = arith.constant 0 : index
    %c0_4 = arith.constant 0 : index
    %10 = vector.load %arg3[%c0_3, %c0_4] : memref<256x128xf32, #tpu.memory_space<vmem>>, vector<256x128xf32>
    %cst = arith.constant dense<0.000000e+00> : vector<128x128xf32>
    %11 = tpu.matmul %9, %10, %cst {dimension_numbers = #tpu.dot_dimension_numbers<[1], [0], [0], [1], [0, 0, 1, 1], [], []>} : vector<128x256xf32>, vector<256x128xf32>, vector<128x128xf32> -> vector<128x128xf32>
    %c0_5 = arith.constant 0 : index
    %c0_6 = arith.constant 0 : index
    %12 = vector.load %arg4[%c0_5, %c0_6] : memref<128x128xf32, #tpu.memory_space<vmem>>, vector<128x128xf32>
    tpu.vector_store %arg4[%c0_5, %c0_6], %11 {strides = array<i32>} : memref<128x128xf32, #tpu.memory_space<vmem>>, vector<128x128xf32>,
    return
  }
  func.func @transform_0(%arg0: i32) -> (i32, i32) {
    %c0_i32 = arith.constant 0 : i32
    %c0_i32_0 = arith.constant 0 : i32
    return %arg0, %c0_i32 : i32, i32
  }
  func.func @transform_1(%arg0: i32) -> (i32, i32) {
    %c0_i32 = arith.constant 0 : i32
    %c0_i32_0 = arith.constant 0 : i32
    return %arg0, %c0_i32 : i32, i32
  }
  func.func @transform_2(%arg0: i32) -> (i32, i32) {
    %c0_i32 = arith.constant 0 : i32
    %c0_i32_0 = arith.constant 0 : i32
    %c0_i32_1 = arith.constant 0 : i32
    return %c0_i32, %c0_i32_0 : i32, i32
  }
  func.func @transform_3(%arg0: i32) -> (i32, i32) {
    %c0_i32 = arith.constant 0 : i32
    %c0_i32_0 = arith.constant 0 : i32
    return %arg0, %c0_i32 : i32, i32
  }
}

</mosaic_0001>

<bundles_post_ra>
// kernel: _encode_rows.1
= control target key start
LH: loop header
LB: loop body
LE: loop exit
PB: predicated region body
PF: predicated region fallthrough
CT: control target
= control target key end

     0   :  { %v682_v0 = vmov 0   ;;  %s1045_s1 = inlined_call_operand.vmem [shape: s32[128,1], index: 1, kind: input, shape index: {}]   ;;  %s1046_s0 = inlined_call_operand.vmem [shape: s32[128,1], index: 0, kind: input, shape index: {}]   ;;  %s1047_s2 = inlined_call_operand.vmem [shape: f32[256,128], index: 2, kind: input, shape index: {}]   ;;  %s1048_s3 = inlined_call_operand.vmem [shape: f32[128,128], index: 3, kind: output, shape index: {}]  }
   0x1   :  { %681 = vset.pattern.permute.xlu1 %v682_v0  ;;  %680 = vset.pattern.permute.xlu0 %v682_v0  ;;  %v30_v1 = vld [vmem:[%s1045_s1] sm:$0xff]  ;;  %v23_v5 = vld [vmem:[%s1046_s0 + $0x48] sm:$0xff]  ;;  %v336_v9 = vld [vmem:[%s1047_s2 + $0xf8] sm:$0xff] }
   0x2   :  { %v14_v2 = vld [vmem:[%s1046_s0] sm:$0xff]  ;;  %130 = vperm.xlu1 %681, %v30_v1   ;;  %v15_v6 = vld [vmem:[%s1046_s0 + $0x8] sm:$0xff]  ;;  %566 = vmatprep.subr.mxu0 %v336_v9  ;;  %v320_v10 = vld [vmem:[%s1047_s2 + $0x78] sm:$0xff]  ;;  %v46_v1 = vlaneseq }
   0x3   :  { %50 = vperm.xlu0 %680, %v14_v2   ;;  %v38_v3 = vld [vmem:[%s1045_s1 + $0x40] sm:$0xff]  ;;  %v39_v7 = vld [vmem:[%s1045_s1 + $0x48] sm:$0xff]  ;;  %v335_v11 = vld [vmem:[%s1047_s2 + $0xf0] sm:$0xff]  ;;  %646 = vmatprep.subr.mxu1 %v336_v9 }
   0x4   :  { %v22_v4 = vld [vmem:[%s1046_s0 + $0x40] sm:$0xff]  ;;  %v31_v8 = vld [vmem:[%s1045_s1 + $0x8] sm:$0xff]  ;;  %567 = vmatpush3.msra.mxu0 %v320_v10  ;;  %v319_v12 = vld [vmem:[%s1047_s2 + $0x70] sm:$0xff]  ;;  %662 = vmatpush3.msra.mxu1 %v320_v10  ;;  %v896_v2 = vand.u32 127, %v46_v1 }
   0x5   :  { %v334_v13 = vld [vmem:[%s1047_s2 + $0xe8] sm:$0xff]  ;;  %v24_v14 = vld [vmem:[%s1046_s0 + $0x50] sm:$0xff]  ;;  %568 = vmatprep.subr.mxu0 %v335_v11  ;;  %647 = vmatprep.subr.mxu1 %v335_v11  ;;  %v333_v17 = vld [vmem:[%s1047_s2 + $0xe0] sm:$0xff] }
   0x6   :  { %154 = vperm.xlu1 %681, %v38_v3   ;;  %v16_v15 = vld [vmem:[%s1046_s0 + $0x10] sm:$0xff]  ;;  %569 = vmatpush3.msra.mxu0 %v319_v12  ;;  %v318_v16 = vld [vmem:[%s1047_s2 + $0x68] sm:$0xff]  ;;  %v317_v18 = vld [vmem:[%s1047_s2 + $0x60] sm:$0xff]  ;;  %v899_v3 = vadd.s32 128, %v896_v2 }
   0x7   :  { %74 = vperm.xlu0 %680, %v22_v4   ;;  %663 = vmatpush3.msra.mxu1 %v319_v12  ;;  %v40_v19 = vld [vmem:[%s1045_s1 + $0x50] sm:$0xff]  ;;  %v332_v21 = vld [vmem:[%s1047_s2 + $0xd8] sm:$0xff]  ;;  %v330_v27 = vld [vmem:[%s1047_s2 + $0xc8] sm:$0xff] }
   0x8   :  { %570 = vmatprep.subr.mxu0 %v334_v13  ;;  %648 = vmatprep.subr.mxu1 %v334_v13  ;;  %v32_v20 = vld [vmem:[%s1045_s1 + $0x10] sm:$0xff]  ;;  %v316_v22 = vld [vmem:[%s1047_s2 + $0x58] sm:$0xff]  ;;  %v314_v28 = vld [vmem:[%s1047_s2 + $0x48] sm:$0xff] }
   0x9   :  { %571 = vmatpush3.msra.mxu0 %v318_v16  ;;  %664 = vmatpush3.msra.mxu1 %v318_v16  ;;  %v331_v23 = vld [vmem:[%s1047_s2 + $0xd0] sm:$0xff]  ;;  %v25_v24 = vld [vmem:[%s1046_s0 + $0x58] sm:$0xff]  ;;  %v329_v31 = vld [vmem:[%s1047_s2 + $0xc0] sm:$0xff] }
   0xa   :  { %77 = vperm.xlu1 %681, %v23_v5   ;;  %572 = vmatprep.subr.mxu0 %v333_v17  ;;  %v17_v25 = vld [vmem:[%s1046_s0 + $0x18] sm:$0xff]  ;;  %v315_v26 = vld [vmem:[%s1047_s2 + $0x50] sm:$0xff]  ;;  %v313_v32 = vld [vmem:[%s1047_s2 + $0x40] sm:$0xff] }
   0xb   :  { %53 = vperm.xlu0 %680, %v15_v6   ;;  %649 = vmatprep.subr.mxu1 %v333_v17  ;;  %v41_v29 = vld [vmem:[%s1045_s1 + $0x58] sm:$0xff]  ;;  %v26_v34 = vld [vmem:[%s1046_s0 + $0x60] sm:$0xff]  ;;  %v327_v37 = vld [vmem:[%s1047_s2 + $0xb0] sm:$0xff]  ;;  %v683_v6 = vmov 1.0  }
   0xc   :  { %573 = vmatpush3.msra.mxu0 %v317_v18  ;;  %665 = vmatpush3.msra.mxu1 %v317_v18  ;;  %v33_v30 = vld [vmem:[%s1045_s1 + $0x18] sm:$0xff]  ;;  %v18_v35 = vld [vmem:[%s1046_s0 + $0x20] sm:$0xff]  ;;  %v311_v38 = vld [vmem:[%s1047_s2 + $0x30] sm:$0xff] }
   0xd   :  { %574 = vmatprep.subr.mxu0 %v332_v21  ;;  %650 = vmatprep.subr.mxu1 %v332_v21  ;;  %v328_v33 = vld [vmem:[%s1047_s2 + $0xb8] sm:$0xff]  ;;  %v42_v39 = vld [vmem:[%s1045_s1 + $0x60] sm:$0xff]  ;;  %v326_v41 = vld [vmem:[%s1047_s2 + $0xa8] sm:$0xff] }
   0xe   :  { %157 = vperm.xlu1 %681, %v39_v7   ;;  %575 = vmatpush3.msra.mxu0 %v316_v22  ;;  %v312_v36 = vld [vmem:[%s1047_s2 + $0x38] sm:$0xff]  ;;  %v34_v40 = vld [vmem:[%s1045_s1 + $0x20] sm:$0xff]  ;;  %v310_v42 = vld [vmem:[%s1047_s2 + $0x28] sm:$0xff] }
   0xf   :  { %133 = vperm.xlu0 %680, %v31_v8   ;;  %666 = vmatpush3.msra.mxu1 %v316_v22  ;;  %v325_v43 = vld [vmem:[%s1047_s2 + $0xa0] sm:$0xff]  ;;  %v27_v44 = vld [vmem:[%s1046_s0 + $0x68] sm:$0xff]  ;;  %v324_v47 = vld [vmem:[%s1047_s2 + $0x98] sm:$0xff] }
  0x10   :  { %576 = vmatprep.subr.mxu0 %v331_v23  ;;  %651 = vmatprep.subr.mxu1 %v331_v23  ;;  %v19_v45 = vld [vmem:[%s1046_s0 + $0x28] sm:$0xff]  ;;  %v309_v46 = vld [vmem:[%s1047_s2 + $0x20] sm:$0xff]  ;;  %v308_v48 = vld [vmem:[%s1047_s2 + $0x18] sm:$0xff] }
  0x11   :  { %577 = vmatpush3.msra.mxu0 %v315_v26  ;;  %667 = vmatpush3.msra.mxu1 %v315_v26  ;;  %v43_v49 = vld [vmem:[%s1045_s1 + $0x68] sm:$0xff]  ;;  %v323_v51 = vld [vmem:[%s1047_s2 + $0x90] sm:$0xff]  ;;  %v321_v57 = vld [vmem:[%s1047_s2 + $0x80] sm:$0xff] }
  0x12   :  { %80 = vperm.xlu1 %681, %v24_v14   ;;  %578 = vmatprep.subr.mxu0 %v330_v27  ;;  %v35_v50 = vld [vmem:[%s1045_s1 + $0x28] sm:$0xff]  ;;  %v307_v52 = vld [vmem:[%s1047_s2 + $0x10] sm:$0xff]  ;;  %v305_v58 = vld [vmem:[%s1047_s2] sm:$0xff] }
  0x13   :  { %56 = vperm.xlu0 %680, %v16_v15   ;;  %652 = vmatprep.subr.mxu1 %v330_v27  ;;  %v322_v53 = vld [vmem:[%s1047_s2 + $0x88] sm:$0xff]  ;;  %v28_v54 = vld [vmem:[%s1046_s0 + $0x70] sm:$0xff]  ;;  %v29_v61 = vld [vmem:[%s1046_s0 + $0x78] sm:$0xff] }
  0x14   :  { %579 = vmatpush3.msra.mxu0 %v314_v28  ;;  %668 = vmatpush3.msra.mxu1 %v314_v28  ;;  %v20_v55 = vld [vmem:[%s1046_s0 + $0x30] sm:$0xff]  ;;  %v306_v56 = vld [vmem:[%s1047_s2 + $0x8] sm:$0xff]  ;;  %v21_v62 = vld [vmem:[%s1046_s0 + $0x38] sm:$0xff] }
  0x15   :  { %580 = vmatprep.subr.mxu0 %v329_v31  ;;  %653 = vmatprep.subr.mxu1 %v329_v31  ;;  %v44_v59 = vld [vmem:[%s1045_s1 + $0x70] sm:$0xff]  ;;  %v45_v63 = vld [vmem:[%s1045_s1 + $0x78] sm:$0xff] }
  0x16   :  { %160 = vperm.xlu1 %681, %v40_v19   ;;  %581 = vmatpush3.msra.mxu0 %v313_v32  ;;  %v36_v60 = vld [vmem:[%s1045_s1 + $0x30] sm:$0xff]  ;;  %v37_v0 = vld [vmem:[%s1045_s1 + $0x38] sm:$0xff] }
  0x17   :  { %136 = vperm.xlu0 %680, %v32_v20   ;;  %669 = vmatpush3.msra.mxu1 %v313_v32 }
  0x18   :  { %582 = vmatprep.subr.mxu0 %v328_v33  ;;  %654 = vmatprep.subr.mxu1 %v328_v33 }
  0x19   :  { %583 = vmatpush3.msra.mxu0 %v312_v36  ;;  %670 = vmatpush3.msra.mxu1 %v312_v36 }
  0x1a   :  { %83 = vperm.xlu1 %681, %v25_v24   ;;  %584 = vmatprep.subr.mxu0 %v327_v37 }
  0x1b   :  { %59 = vperm.xlu0 %680, %v17_v25   ;;  %655 = vmatprep.subr.mxu1 %v327_v37 }
  0x1c   :  { %585 = vmatpush3.msra.mxu0 %v311_v38  ;;  %671 = vmatpush3.msra.mxu1 %v311_v38 }
  0x1d   :  { %586 = vmatprep.subr.mxu0 %v326_v41  ;;  %656 = vmatprep.subr.mxu1 %v326_v41 }
  0x1e   :  { %163 = vperm.xlu1 %681, %v41_v29   ;;  %587 = vmatpush3.msra.mxu0 %v310_v42 }
  0x1f   :  { %139 = vperm.xlu0 %680, %v33_v30   ;;  %672 = vmatpush3.msra.mxu1 %v310_v42 }
  0x20   :  { %588 = vmatprep.subr.mxu0 %v325_v43  ;;  %657 = vmatprep.subr.mxu1 %v325_v43 }
  0x21   :  { %589 = vmatpush3.msra.mxu0 %v309_v46  ;;  %673 = vmatpush3.msra.mxu1 %v309_v46 }
  0x22   :  { %86 = vperm.xlu1 %681, %v26_v34   ;;  %590 = vmatprep.subr.mxu0 %v324_v47 }
  0x23   :  { %62 = vperm.xlu0 %680, %v18_v35   ;;  %658 = vmatprep.subr.mxu1 %v324_v47 }
  0x24   :  { %591 = vmatpush3.msra.mxu0 %v308_v48  ;;  %674 = vmatpush3.msra.mxu1 %v308_v48 }
  0x25   :  { %592 = vmatprep.subr.mxu0 %v323_v51  ;;  %659 = vmatprep.subr.mxu1 %v323_v51 }
  0x26   :  { %166 = vperm.xlu1 %681, %v42_v39   ;;  %593 = vmatpush3.msra.mxu0 %v307_v52 }
  0x27   :  { %142 = vperm.xlu0 %680, %v34_v40   ;;  %675 = vmatpush3.msra.mxu1 %v307_v52 }
  0x28   :  { %594 = vmatprep.subr.mxu0 %v322_v53  ;;  %660 = vmatprep.subr.mxu1 %v322_v53 }
  0x29   :  { %595 = vmatpush3.msra.mxu0 %v306_v56  ;;  %676 = vmatpush3.msra.mxu1 %v306_v56 }
  0x2a   :  { %89 = vperm.xlu1 %681, %v27_v44   ;;  %596 = vmatprep.subr.mxu0 %v321_v57 }
  0x2b   :  { %65 = vperm.xlu0 %680, %v19_v45   ;;  %661 = vmatprep.subr.mxu1 %v321_v57 }
  0x2c   :  { %597 = vmatpush3.msra.mxu0 %v305_v58  ;;  %677 = vmatpush3.msra.mxu1 %v305_v58 }
  0x2e   :  { %169 = vperm.xlu1 %681, %v43_v49  }
  0x2f   :  { %145 = vperm.xlu0 %680, %v35_v50  }
  0x32   :  { %92 = vperm.xlu1 %681, %v28_v54  }
  0x33   :  { %68 = vperm.xlu0 %680, %v20_v55  }
  0x36   :  { %172 = vperm.xlu1 %681, %v44_v59  }
  0x37   :  { %148 = vperm.xlu0 %680, %v36_v60  }
  0x3a   :  { %95 = vperm.xlu1 %681, %v29_v61  }
  0x3b   :  { %71 = vperm.xlu0 %680, %v21_v62  }
  0x3e   :  { %175 = vperm.xlu1 %681, %v45_v63  }
  0x3f   :  { %151 = vperm.xlu0 %680, %v37_v0  }
  0x7d   :  { %v131_v4 = vpop.permute.xlu1 %130 }
  0x7e   :  { %v51_v5 = vpop.permute.xlu0 %50  ;;  %vm177_vm0 = vcmp.eq.s32.totalorder %v896_v2, %v131_v4  ;;  %vm178_vm3 = vcmp.eq.s32.totalorder %v899_v3, %v131_v4 }
  0x7f   :  { %vm97_vm1 = vcmp.eq.s32.totalorder %v896_v2, %v51_v5  ;;  %vm98_vm2 = vcmp.eq.s32.totalorder %v899_v3, %v51_v5 }
  0x80   :  { %vm209_vm4 = vmor %vm97_vm1, %vm177_vm0 }
  0x81   :  { %vm210_vm5 = vmor %vm98_vm2, %vm178_vm3  ;;  %v155_v7 = vpop.permute.xlu1 %154 }
  0x82   :  { %534 = vmatprep.mubr.msk.f32.mxu0 %vm210_vm5, %v683_v6  ;;  %v75_v8 = vpop.permute.xlu0 %74  ;;  %vm193_vm6 = vcmp.eq.s32.totalorder %v896_v2, %v155_v7  ;;  %vm194_vm9 = vcmp.eq.s32.totalorder %v899_v3, %v155_v7 }
  0x83   :  { %535 = vmatmul.mubr.msk.f32.vlgmr.msra.gmra.mxu0 %vm209_vm4, %v683_v6  ;;  %vm113_vm7 = vcmp.eq.s32.totalorder %v896_v2, %v75_v8  ;;  %vm114_vm8 = vcmp.eq.s32.totalorder %v899_v3, %v75_v8 }
  0x84   :  { %vm225_vm10 = vmor %vm113_vm7, %vm193_vm6 }
  0x85   :  { %vm226_vm11 = vmor %vm114_vm8, %vm194_vm9  ;;  %v78_v9 = vpop.permute.xlu1 %77 }
  0x86   :  { %550 = vmatprep.mubr.msk.f32.mxu1 %vm226_vm11, %v683_v6  ;;  %v54_v10 = vpop.permute.xlu0 %53  ;;  %vm115_vm12 = vcmp.eq.s32.totalorder %v896_v2, %v78_v9  ;;  %vm116_vm0 = vcmp.eq.s32.totalorder %v899_v3, %v78_v9 }
  0x87   :  { %551 = vmatmul.mubr.msk.f32.vlgmr.msra.gmra.mxu1 %vm225_vm10, %v683_v6  ;;  %vm99_vm3 = vcmp.eq.s32.totalorder %v896_v2, %v54_v10  ;;  %vm100_vm5 = vcmp.eq.s32.totalorder %v899_v3, %v54_v10 }
  0x89   :  { %v158_v11 = vpop.permute.xlu1 %157 }
  0x8a   :  { %v134_v12 = vpop.permute.xlu0 %133  ;;  %vm195_vm13 = vcmp.eq.s32.totalorder %v896_v2, %v158_v11  ;;  %vm196_vm14 = vcmp.eq.s32.totalorder %v899_v3, %v158_v11 }
  0x8b   :  { %vm179_vm15 = vcmp.eq.s32.totalorder %v896_v2, %v134_v12  ;;  %vm227_vm1 = vmor %vm115_vm12, %vm195_vm13  ;;  %vm180_vm2 = vcmp.eq.s32.totalorder %v899_v3, %v134_v12 }
  0x8c   :  { %vm228_vm4 = vmor %vm116_vm0, %vm196_vm14 }
  0x8d   :  { %vm211_vm6 = vmor %vm99_vm3, %vm179_vm15  ;;  %552 = vmatprep.mubr.msk.f32.mxu1 %vm228_vm4, %v683_v6  ;;  %v81_v13 = vpop.permute.xlu1 %80 }
  0x8e   :  { %v57_v14 = vpop.permute.xlu0 %56  ;;  %vm212_vm7 = vmor %vm100_vm5, %vm180_vm2  ;;  %553 = vmatmul.mubr.msk.f32.gmra.mxu1 %vm227_vm1, %v683_v6  ;;  %vm117_vm8 = vcmp.eq.s32.totalorder %v896_v2, %v81_v13  ;;  %vm118_vm12 = vcmp.eq.s32.totalorder %v899_v3, %v81_v13 }
  0x8f   :  { %536 = vmatprep.mubr.msk.f32.mxu0 %vm212_vm7, %v683_v6  ;;  %vm101_vm15 = vcmp.eq.s32.totalorder %v896_v2, %v57_v14  ;;  %vm102_vm1 = vcmp.eq.s32.totalorder %v899_v3, %v57_v14 }
  0x90   :  { %537 = vmatmul.mubr.msk.f32.gmra.mxu0 %vm211_vm6, %v683_v6 }
  0x91   :  { %v161_v15 = vpop.permute.xlu1 %160 }
  0x92   :  { %v137_v16 = vpop.permute.xlu0 %136  ;;  %vm197_vm9 = vcmp.eq.s32.totalorder %v896_v2, %v161_v15  ;;  %vm198_vm10 = vcmp.eq.s32.totalorder %v899_v3, %v161_v15 }
  0x93   :  { %vm181_vm11 = vcmp.eq.s32.totalorder %v896_v2, %v137_v16  ;;  %vm229_vm13 = vmor %vm117_vm8, %vm197_vm9  ;;  %vm182_vm14 = vcmp.eq.s32.totalorder %v899_v3, %v137_v16 }
  0x94   :  { %vm230_vm0 = vmor %vm118_vm12, %vm198_vm10 }
  0x95   :  { %vm213_vm2 = vmor %vm101_vm15, %vm181_vm11  ;;  %554 = vmatprep.mubr.msk.f32.mxu1 %vm230_vm0, %v683_v6  ;;  %v84_v17 = vpop.permute.xlu1 %83 }
  0x96   :  { %v60_v18 = vpop.permute.xlu0 %59  ;;  %vm214_vm3 = vmor %vm102_vm1, %vm182_vm14  ;;  %555 = vmatmul.mubr.msk.f32.gmra.mxu1 %vm229_vm13, %v683_v6  ;;  %vm119_vm4 = vcmp.eq.s32.totalorder %v896_v2, %v84_v17  ;;  %vm120_vm8 = vcmp.eq.s32.totalorder %v899_v3, %v84_v17 }
  0x97   :  { %538 = vmatprep.mubr.msk.f32.mxu0 %vm214_vm3, %v683_v6  ;;  %vm103_vm11 = vcmp.eq.s32.totalorder %v896_v2, %v60_v18  ;;  %vm104_vm13 = vcmp.eq.s32.totalorder %v899_v3, %v60_v18 }
  0x98   :  { %539 = vmatmul.mubr.msk.f32.gmra.mxu0 %vm213_vm2, %v683_v6 }
  0x99   :  { %v164_v19 = vpop.permute.xlu1 %163 }
  0x9a   :  { %v140_v20 = vpop.permute.xlu0 %139  ;;  %vm199_vm5 = vcmp.eq.s32.totalorder %v896_v2, %v164_v19  ;;  %vm200_vm6 = vcmp.eq.s32.totalorder %v899_v3, %v164_v19 }
  0x9b   :  { %vm183_vm7 = vcmp.eq.s32.totalorder %v896_v2, %v140_v20  ;;  %vm231_vm9 = vmor %vm119_vm4, %vm199_vm5  ;;  %vm184_vm10 = vcmp.eq.s32.totalorder %v899_v3, %v140_v20 }
  0x9c   :  { %vm232_vm12 = vmor %vm120_vm8, %vm200_vm6 }
  0x9d   :  { %vm215_vm14 = vmor %vm103_vm11, %vm183_vm7  ;;  %556 = vmatprep.mubr.msk.f32.mxu1 %vm232_vm12, %v683_v6  ;;  %v87_v21 = vpop.permute.xlu1 %86 }
  0x9e   :  { %v63_v22 = vpop.permute.xlu0 %62  ;;  %vm216_vm15 = vmor %vm104_vm13, %vm184_vm10  ;;  %557 = vmatmul.mubr.msk.f32.gmra.mxu1 %vm231_vm9, %v683_v6  ;;  %vm121_vm0 = vcmp.eq.s32.totalorder %v896_v2, %v87_v21  ;;  %vm122_vm4 = vcmp.eq.s32.totalorder %v899_v3, %v87_v21 }
  0x9f   :  { %540 = vmatprep.mubr.msk.f32.mxu0 %vm216_vm15, %v683_v6  ;;  %vm105_vm7 = vcmp.eq.s32.totalorder %v896_v2, %v63_v22  ;;  %vm106_vm9 = vcmp.eq.s32.totalorder %v899_v3, %v63_v22 }
  0xa0   :  { %541 = vmatmul.mubr.msk.f32.gmra.mxu0 %vm215_vm14, %v683_v6 }
  0xa1   :  { %v167_v23 = vpop.permute.xlu1 %166 }
  0xa2   :  { %v143_v24 = vpop.permute.xlu0 %142  ;;  %vm201_vm1 = vcmp.eq.s32.totalorder %v896_v2, %v167_v23  ;;  %vm202_vm2 = vcmp.eq.s32.totalorder %v899_v3, %v167_v23 }
  0xa3   :  { %vm185_vm3 = vcmp.eq.s32.totalorder %v896_v2, %v143_v24  ;;  %vm233_vm5 = vmor %vm121_vm0, %vm201_vm1  ;;  %vm186_vm6 = vcmp.eq.s32.totalorder %v899_v3, %v143_v24 }
  0xa4   :  { %vm234_vm8 = vmor %vm122_vm4, %vm202_vm2 }
  0xa5   :  { %vm217_vm10 = vmor %vm105_vm7, %vm185_vm3  ;;  %558 = vmatprep.mubr.msk.f32.mxu1 %vm234_vm8, %v683_v6  ;;  %v90_v25 = vpop.permute.xlu1 %89 }
  0xa6   :  { %v66_v26 = vpop.permute.xlu0 %65  ;;  %vm218_vm11 = vmor %vm106_vm9, %vm186_vm6  ;;  %559 = vmatmul.mubr.msk.f32.gmra.mxu1 %vm233_vm5, %v683_v6  ;;  %vm123_vm12 = vcmp.eq.s32.totalorder %v896_v2, %v90_v25  ;;  %vm124_vm0 = vcmp.eq.s32.totalorder %v899_v3, %v90_v25 }
  0xa7   :  { %542 = vmatprep.mubr.msk.f32.mxu0 %vm218_vm11, %v683_v6  ;;  %vm107_vm3 = vcmp.eq.s32.totalorder %v896_v2, %v66_v26  ;;  %vm108_vm5 = vcmp.eq.s32.totalorder %v899_v3, %v66_v26 }
  0xa8   :  { %543 = vmatmul.mubr.msk.f32.gmra.mxu0 %vm217_vm10, %v683_v6 }
  0xa9   :  { %v170_v27 = vpop.permute.xlu1 %169 }
  0xaa   :  { %v146_v28 = vpop.permute.xlu0 %145  ;;  %vm203_vm13 = vcmp.eq.s32.totalorder %v896_v2, %v170_v27  ;;  %vm204_vm14 = vcmp.eq.s32.totalorder %v899_v3, %v170_v27 }
  0xab   :  { %vm187_vm15 = vcmp.eq.s32.totalorder %v896_v2, %v146_v28  ;;  %vm235_vm1 = vmor %vm123_vm12, %vm203_vm13  ;;  %vm188_vm2 = vcmp.eq.s32.totalorder %v899_v3, %v146_v28 }
  0xac   :  { %vm236_vm4 = vmor %vm124_vm0, %vm204_vm14 }
  0xad   :  { %vm219_vm6 = vmor %vm107_vm3, %vm187_vm15  ;;  %560 = vmatprep.mubr.msk.f32.mxu1 %vm236_vm4, %v683_v6  ;;  %v93_v29 = vpop.permute.xlu1 %92 }
  0xae   :  { %v69_v30 = vpop.permute.xlu0 %68  ;;  %vm220_vm7 = vmor %vm108_vm5, %vm188_vm2  ;;  %561 = vmatmul.mubr.msk.f32.gmra.mxu1 %vm235_vm1, %v683_v6  ;;  %vm125_vm8 = vcmp.eq.s32.totalorder %v896_v2, %v93_v29  ;;  %vm126_vm12 = vcmp.eq.s32.totalorder %v899_v3, %v93_v29 }
  0xaf   :  { %544 = vmatprep.mubr.msk.f32.mxu0 %vm220_vm7, %v683_v6  ;;  %vm109_vm15 = vcmp.eq.s32.totalorder %v896_v2, %v69_v30  ;;  %vm110_vm1 = vcmp.eq.s32.totalorder %v899_v3, %v69_v30 }
  0xb0   :  { %545 = vmatmul.mubr.msk.f32.gmra.mxu0 %vm219_vm6, %v683_v6 }
  0xb1   :  { %v173_v31 = vpop.permute.xlu1 %172 }
  0xb2   :  { %v149_v32 = vpop.permute.xlu0 %148  ;;  %vm205_vm9 = vcmp.eq.s32.totalorder %v896_v2, %v173_v31  ;;  %vm206_vm10 = vcmp.eq.s32.totalorder %v899_v3, %v173_v31 }
  0xb3   :  { %vm189_vm11 = vcmp.eq.s32.totalorder %v896_v2, %v149_v32  ;;  %vm237_vm13 = vmor %vm125_vm8, %vm205_vm9  ;;  %vm190_vm14 = vcmp.eq.s32.totalorder %v899_v3, %v149_v32 }
  0xb4   :  { %vm238_vm0 = vmor %vm126_vm12, %vm206_vm10 }
  0xb5   :  { %vm221_vm2 = vmor %vm109_vm15, %vm189_vm11  ;;  %562 = vmatprep.mubr.msk.f32.mxu1 %vm238_vm0, %v683_v6  ;;  %v96_v33 = vpop.permute.xlu1 %95 }
  0xb6   :  { %v72_v34 = vpop.permute.xlu0 %71  ;;  %vm222_vm3 = vmor %vm110_vm1, %vm190_vm14  ;;  %563 = vmatmul.mubr.msk.f32.gmra.mxu1 %vm237_vm13, %v683_v6  ;;  %vm127_vm4 = vcmp.eq.s32.totalorder %v896_v2, %v96_v33  ;;  %vm128_vm8 = vcmp.eq.s32.totalorder %v899_v3, %v96_v33 }
  0xb7   :  { %546 = vmatprep.mubr.msk.f32.mxu0 %vm222_vm3, %v683_v6  ;;  %vm111_vm11 = vcmp.eq.s32.totalorder %v896_v2, %v72_v34  ;;  %vm112_vm13 = vcmp.eq.s32.totalorder %v899_v3, %v72_v34 }
  0xb8   :  { %547 = vmatmul.mubr.msk.f32.gmra.mxu0 %vm221_vm2, %v683_v6 }
  0xb9   :  { %v176_v35 = vpop.permute.xlu1 %175 }
  0xba   :  { %v152_v36 = vpop.permute.xlu0 %151  ;;  %vm207_vm5 = vcmp.eq.s32.totalorder %v896_v2, %v176_v35  ;;  %vm208_vm6 = vcmp.eq.s32.totalorder %v899_v3, %v176_v35 }
  0xbb   :  { %vm191_vm7 = vcmp.eq.s32.totalorder %v896_v2, %v152_v36  ;;  %vm239_vm9 = vmor %vm127_vm4, %vm207_vm5  ;;  %vm192_vm10 = vcmp.eq.s32.totalorder %v899_v3, %v152_v36 }
  0xbc   :  { %vm240_vm12 = vmor %vm128_vm8, %vm208_vm6 }
  0xbd   :  { %vm223_vm14 = vmor %vm111_vm11, %vm191_vm7  ;;  %564 = vmatprep.mubr.msk.f32.mxu1 %vm240_vm12, %v683_v6 }
  0xbe   :  { %vm224_vm15 = vmor %vm112_vm13, %vm192_vm10  ;;  %565 = vmatmul.mubr.msk.f32.gmra.mxu1 %vm239_vm9, %v683_v6 }
  0xbf   :  { %548 = vmatprep.mubr.msk.f32.mxu0 %vm224_vm15, %v683_v6 }
  0xc0   :  { %549 = vmatmul.mubr.msk.f32.gmra.mxu0 %vm223_vm14, %v683_v6 }
 0x143   :  { %v598_v37 = vpop.f32.mrf.mxu0 }
 0x145   :  { %v599_v38 = vpop.f32.mrf.mxu0 }
 0x146   :  { %v600_v39 = vadd.f32 %v599_v38, %v598_v37 }
 0x147   :  { %v622_v40 = vpop.f32.mrf.mxu1 }
 0x148   :  { %482 = vst [vmem:[%s1048_s3] sm:$0xff] %v600_v39 }
 0x149   :  { %v623_v41 = vpop.f32.mrf.mxu1 }
 0x14a   :  { %v624_v42 = vadd.f32 %v623_v41, %v622_v40 }
 0x14c   :  { %490 = vst [vmem:[%s1048_s3 + $0x40] sm:$0xff] %v624_v42 }
 0x14e   :  { %v625_v43 = vpop.f32.mrf.mxu1 }
 0x150   :  { %v601_v44 = vpop.f32.mrf.mxu0  ;;  %v626_v45 = vpop.f32.mrf.mxu1 }
 0x151   :  { %v627_v46 = vadd.f32 %v626_v45, %v625_v43 }
 0x152   :  { %v602_v47 = vpop.f32.mrf.mxu0 }
 0x153   :  { %v603_v48 = vadd.f32 %v602_v47, %v601_v44  ;;  %491 = vst [vmem:[%s1048_s3 + $0x48] sm:$0xff] %v627_v46 }
 0x155   :  { %483 = vst [vmem:[%s1048_s3 + $0x8] sm:$0xff] %v603_v48 }
 0x156   :  { %v628_v49 = vpop.f32.mrf.mxu1 }
 0x158   :  { %v604_v50 = vpop.f32.mrf.mxu0  ;;  %v629_v51 = vpop.f32.mrf.mxu1 }
 0x159   :  { %v630_v52 = vadd.f32 %v629_v51, %v628_v49 }
 0x15a   :  { %v605_v53 = vpop.f32.mrf.mxu0 }
 0x15b   :  { %v606_v54 = vadd.f32 %v605_v53, %v604_v50  ;;  %492 = vst [vmem:[%s1048_s3 + $0x50] sm:$0xff] %v630_v52 }
 0x15d   :  { %484 = vst [vmem:[%s1048_s3 + $0x10] sm:$0xff] %v606_v54 }
 0x15e   :  { %v631_v55 = vpop.f32.mrf.mxu1 }
 0x160   :  { %v607_v56 = vpop.f32.mrf.mxu0  ;;  %v632_v57 = vpop.f32.mrf.mxu1 }
 0x161   :  { %v633_v58 = vadd.f32 %v632_v57, %v631_v55 }
 0x162   :  { %v608_v59 = vpop.f32.mrf.mxu0 }
 0x163   :  { %v609_v60 = vadd.f32 %v608_v59, %v607_v56  ;;  %493 = vst [vmem:[%s1048_s3 + $0x58] sm:$0xff] %v633_v58 }
 0x165   :  { %485 = vst [vmem:[%s1048_s3 + $0x18] sm:$0xff] %v609_v60 }
 0x166   :  { %v634_v61 = vpop.f32.mrf.mxu1 }
 0x168   :  { %v610_v62 = vpop.f32.mrf.mxu0  ;;  %v635_v63 = vpop.f32.mrf.mxu1 }
 0x169   :  { %v636_v0 = vadd.f32 %v635_v63, %v634_v61 }
 0x16a   :  { %v611_v1 = vpop.f32.mrf.mxu0 }
 0x16b   :  { %v612_v2 = vadd.f32 %v611_v1, %v610_v62  ;;  %494 = vst [vmem:[%s1048_s3 + $0x60] sm:$0xff] %v636_v0 }
 0x16d   :  { %486 = vst [vmem:[%s1048_s3 + $0x20] sm:$0xff] %v612_v2 }
 0x16e   :  { %v637_v3 = vpop.f32.mrf.mxu1 }
 0x170   :  { %v613_v4 = vpop.f32.mrf.mxu0  ;;  %v638_v5 = vpop.f32.mrf.mxu1 }
 0x171   :  { %v639_v6 = vadd.f32 %v638_v5, %v637_v3 }
 0x172   :  { %v614_v7 = vpop.f32.mrf.mxu0 }
 0x173   :  { %v615_v8 = vadd.f32 %v614_v7, %v613_v4  ;;  %495 = vst [vmem:[%s1048_s3 + $0x68] sm:$0xff] %v639_v6 }
 0x175   :  { %487 = vst [vmem:[%s1048_s3 + $0x28] sm:$0xff] %v615_v8 }
 0x176   :  { %v640_v9 = vpop.f32.mrf.mxu1 }
 0x178   :  { %v616_v10 = vpop.f32.mrf.mxu0  ;;  %v641_v11 = vpop.f32.mrf.mxu1 }
 0x179   :  { %v642_v12 = vadd.f32 %v641_v11, %v640_v9 }
 0x17a   :  { %v617_v13 = vpop.f32.mrf.mxu0 }
 0x17b   :  { %v618_v14 = vadd.f32 %v617_v13, %v616_v10  ;;  %496 = vst [vmem:[%s1048_s3 + $0x70] sm:$0xff] %v642_v12 }
 0x17d   :  { %488 = vst [vmem:[%s1048_s3 + $0x30] sm:$0xff] %v618_v14 }
 0x17e   :  { %v643_v15 = vpop.f32.mrf.mxu1 }
 0x180   :  { %v619_v16 = vpop.f32.mrf.mxu0  ;;  %v644_v17 = vpop.f32.mrf.mxu1 }
 0x181   :  { %v645_v18 = vadd.f32 %v644_v17, %v643_v15 }
 0x182   :  { %v620_v19 = vpop.f32.mrf.mxu0 }
 0x183   :  { %v621_v20 = vadd.f32 %v620_v19, %v619_v16  ;;  %497 = vst [vmem:[%s1048_s3 + $0x78] sm:$0xff] %v645_v18 }
 0x185   :  { %489 = vst [vmem:[%s1048_s3 + $0x38] sm:$0xff] %v621_v20 }

</bundles_post_ra>
